<compile_context>
chip_gen: v5e
topology: v5e:2x2
jax: 0.10.0
libtpu: 0.0.40
codegen_flags: <defaults>
</compile_context>

<pallas_src>
import jax
import jax.numpy as jnp
from jax.experimental import pallas as pl
from jax.experimental.pallas import tpu as pltpu


def _copy_kernel(x_ref, o_ref):
    # Straight tile copy; the chomp lives in the grid/BlockSpecs.
    o_ref[...] = x_ref[...]


def _round_up(x: int, m: int) -> int:
    return (x + m - 1) // m * m


def chomp1d(x: jax.Array, chomp_size: int) -> jax.Array:
    """Pallas equivalent of Chomp1d.forward: x[:, :, :-chomp_size].contiguous()."""
    assert chomp_size >= 0, "chomp_size must be non-negative"
    n, c, l = x.shape
    if chomp_size == 0:
        # PyTorch's x[:, :, :-0] is an empty slice; mirror that exactly.
        return x[:, :, :0]
    l_out = l - chomp_size
    assert l_out > 0, "chomp_size must be smaller than the sequence length"

    # Collapse (N, C, L) -> (N*C, L): free, contiguous; clean (sublane, lane) tiling.
    rows = n * c
    x2 = x.reshape(rows, l)

    itemsize = jnp.dtype(x.dtype).itemsize
    # Native sublane packing: 8 (f32), 16 (bf16), 32 (int8).
    sublane = 8 * max(1, 4 // itemsize)

    lanes_full = _round_up(l_out, 128)   # full padded lane extent
    rows_full = _round_up(rows, sublane)  # full padded row extent

    # Byte budget per block buffer.  Measured tiled-copy data: ~1 MiB -> 85%,
    # ~4 MiB -> 86% of HBM roofline; 4 MiB keeps 2 in + 2 out buffers at
    # <= 16 MiB total, which fits every generation (incl. v7x 64 MiB VMEM).
    target_block_bytes = 4 * 1024 * 1024

    # 1) Lane axis first (lane-dense, unmasked stores): give it as much of the
    #    byte budget as it can use assuming a minimal one-sublane-group row
    #    tile; multiple of 128, never above the full padded width.
    lane_cap = max(128, (target_block_bytes // (sublane * itemsize)) // 128 * 128)
    lane_tile = min(lanes_full, lane_cap)

    # 2) Spend whatever budget remains on the row axis (multiple of the
    #    sublane packing, never above the full padded row extent).
    row_cap = max(sublane, (target_block_bytes // (lane_tile * itemsize)) // sublane * sublane)
    row_tile = min(rows_full, row_cap)

    grid = (pl.cdiv(rows, row_tile), pl.cdiv(l_out, lane_tile))

    out2 = pl.pallas_call(
        _copy_kernel,
        out_shape=jax.ShapeDtypeStruct((rows, l_out), x.dtype),
        grid=grid,
        # Identical block shape + index_map for input and output: block (i, j)
        # covers element columns [j*lane_tile, (j+1)*lane_tile) in both arrays,
        # so the copy is element-aligned.  Since the grid only covers L_out
        # lane blocks, the chomped tail is never written and (outside the final
        # partial block) never read; Pallas masks the partial output block.
        in_specs=[pl.BlockSpec((row_tile, lane_tile), lambda i, j: (i, j))],
        out_specs=pl.BlockSpec((row_tile, lane_tile), lambda i, j: (i, j)),
        compiler_params=pltpu.CompilerParams(
            # Pure copy: every grid point independent.  Tiles are kept large
            # (BW-bound), so megacore sharding only matters for tiny tensors.
            dimension_semantics=("parallel", "parallel"),
            # <= 16 MiB actually needed; 48 MiB raises v5e's 16 MiB scoped
            # default and stays within v7x's 64 MiB physical VMEM.
            vmem_limit_bytes=48 * 1024 * 1024,
        ),
        cost_estimate=pl.CostEstimate(
            flops=0,
            transcendentals=0,
            bytes_accessed=2 * rows * l_out * itemsize,
        ),
    )(x2)

    return out2.reshape(n, c, l_out)


if __name__ == "__main__":
    key = jax.random.PRNGKey(0)

    # Small shape consistent with the module's (N, C, L) conv1d layout.
    N, C, L = 2, 4, 16
    chomp_size = 3  # e.g. (kernel_size - 1) * dilation from a TCN block
    x = jax.random.normal(key, (N, C, L), dtype=jnp.float32)

    out = jax.block_until_ready(chomp1d(x, chomp_size))
    ref = x[:, :, :-chomp_size]
    assert out.shape == (N, C, L - chomp_size), out.shape
    assert out.dtype == x.dtype
    assert jnp.array_equal(out, ref), "Pallas chomp output mismatch (small)"

    # Exercise the small-rows / long-L path (lane tile widens to full L_out)
    # and the partial-remainder handling.
    x2 = jax.random.normal(jax.random.PRNGKey(1), (2, 4, 1200), dtype=jnp.float32)
    out2 = jax.block_until_ready(chomp1d(x2, 8))
    assert jnp.array_equal(out2, x2[:, :, :-8]), "Pallas chomp output mismatch (tiled)"

    # Narrow dtype path (bf16 sublane packing = 16).
    x3 = jax.random.normal(jax.random.PRNGKey(2), (2, 16, 300)).astype(jnp.bfloat16)
    out3 = jax.block_until_ready(chomp1d(x3, 5))
    assert jnp.array_equal(out3, x3[:, :, :-5]), "Pallas chomp output mismatch (bf16)"

    print("KERNEL_OK")
</pallas_src>

<mosaic_0001>
module attributes {stable_mosaic.version = 11 : i64} {
  func.func @_copy_kernel(%arg0: i32, %arg1: i32, %arg2: memref<8x128xf32, #tpu.memory_space<vmem>>, %arg3: memref<8x128xf32, #tpu.memory_space<vmem>>) attributes {dimension_semantics = [#tpu.dimension_semantics<parallel>, #tpu.dimension_semantics<parallel>], iteration_bounds = array<i64: 1, 1>, scalar_prefetch = 0 : i64, scratch_operands = 0 : i64, tpu.core_type = #tpu.core_type<tc>, window_params = [{transform_indices = @transform_0, window_bounds = array<i64: 8, 128>}, {transform_indices = @transform_1, window_bounds = array<i64: 8, 128>}]} {
    %c0 = arith.constant 0 : index
    %c0_0 = arith.constant 0 : index
    %0 = vector.load %arg2[%c0, %c0_0] : memref<8x128xf32, #tpu.memory_space<vmem>>, vector<8x128xf32>
    %c0_1 = arith.constant 0 : index
    %c0_2 = arith.constant 0 : index
    %1 = vector.load %arg3[%c0_1, %c0_2] : memref<8x128xf32, #tpu.memory_space<vmem>>, vector<8x128xf32>
    tpu.vector_store %arg3[%c0_1, %c0_2], %0 {strides = array<i32>} : memref<8x128xf32, #tpu.memory_space<vmem>>, vector<8x128xf32>,
    return
  }
  func.func @transform_0(%arg0: i32, %arg1: i32) -> (i32, i32) {
    %c0_i32 = arith.constant 0 : i32
    return %arg0, %arg1 : i32, i32
  }
  func.func @transform_1(%arg0: i32, %arg1: i32) -> (i32, i32) {
    %c0_i32 = arith.constant 0 : i32
    return %arg0, %arg1 : i32, i32
  }
}

</mosaic_0001>

<bundles_post_ra>
// kernel: tpu_custom_call.1
= control target key start
LH: loop header
LB: loop body
LE: loop exit
PB: predicated region body
PF: predicated region fallthrough
CT: control target
= control target key end

     0   :  { %6 = vsyncpa [#allocation3], 0  ;;  %s114_s0 = inlined_call_operand.hbm [shape: f32[8,16], index: 0, kind: input, shape index: {}]   ;;  %s115_s1 = inlined_call_operand.hbm [shape: f32[8,13], index: 1, kind: output, shape index: {}]  }
   0x1   :  { %7 = vsyncpa [#allocation4], 0  ;;  %s13_s8 = sshll.u32 %s114_s0, 4  ;;  %s96_s9 = smov [#allocation2]   ;;  %s14_s8 = int_to_ptr.hbm [resolvable:$true] %s13_s8 }
   0x2   :  { %s15_s10 = sshll.u32 %s96_s9, 4  ;;  %s16_s10 = int_to_ptr.vmem [resolvable:$true] %s15_s10 }
   0x3   :  { %18 = dma.hbm_to_vmem [thread:$0]  %s14_s8, 128, %s16_s10, [#allocation3]  }
   0x4   :  { %92 = dma.done.wait [#allocation3], 128  }
   0x5   :  { %93 = vsyncadd [#allocation3], 4294967168  ;;  %s97_s11 = smov [#allocation5]   ;;  %s32_s15 = sshll.u32 %s115_s1, 4  ;;  %v23_v0 = vld [vmem:[#allocation2] sm:$0xff]  ;;  %s33_s15 = int_to_ptr.hbm [resolvable:$true] %s32_s15 }
   0x6   :  { %s30_s12 = sshll.u32 %s97_s11, 4  ;;  %24 = vst [vmem:[#allocation5] sm:$0xff] %v23_v0  ;;  %s31_s12 = int_to_ptr.vmem [resolvable:$true] %s30_s12 }
   0x7   :  { %35 = dma.vmem_to_hbm [thread:$0]  %s31_s12, 128, %s33_s15, [#allocation4]  }
   0x8   :  { %94 = dma.done.wait [#allocation4], 128  }
   0x9   :  { %95 = vsyncadd [#allocation4], 4294967168 }
   0xa   :  { %40 = vsyncpa [#allocation3], 1 }
   0xb   :  { %41 = vsyncpa [#allocation4], 1 }

</bundles_post_ra>
